<compile_context>
chip_gen: v6e
topology: v6e:2x2x1
jax: 0.10.0
libtpu: 0.0.40
codegen_flags: <defaults>
</compile_context>

<pallas_src>
import jax
import jax.numpy as jnp
from jax.experimental import pallas as pl
from jax.experimental.pallas import tpu as pltpu

LANE = 128           # lane width (last-dim tiling unit)
SUBLANE_BF16 = 16    # bf16 packs 16 rows per sublane group -> row-tile multiple


def _round_up(a: int, m: int) -> int:
    return -(-a // m) * m


# ----------------------------------------------------------------------------
# Kernel
# ----------------------------------------------------------------------------
def user_tower_kernel(x_ref, w1_ref, b1_ref, w2_ref, b2_ref, o_ref):
    # Layer 1: Linear(input_dim, 64) + ReLU.  In-kernel bf16 cast of x (free on
    # the VPU in a memory-bound kernel), f32 MXU accumulation.
    x = x_ref[...].astype(jnp.bfloat16)
    h = jnp.dot(x, w1_ref[...], preferred_element_type=jnp.float32)
    h = jnp.maximum(h + b1_ref[...], 0.0)            # f32 epilogue (v5e-safe)
    # Layer 2: Linear(64, emb_p) + ReLU.
    o = jnp.dot(h.astype(jnp.bfloat16), w2_ref[...],
                preferred_element_type=jnp.float32)
    o = jnp.maximum(o + b2_ref[...], 0.0)
    o_ref[...] = o.astype(o_ref.dtype)               # bf16 store: half writeback


# ----------------------------------------------------------------------------
# One-time parameter preparation (hoisted out of the per-call path)
# ----------------------------------------------------------------------------
def prepare_user_tower_params(w1, b1, w2, b2):
    """w1:(in,64) b1:(1,64) w2:(64,E) b2:(1,E) f32 -> padded/bf16 kernel params."""
    emb_dim = w2.shape[1]
    n_pad = (-emb_dim) % LANE                 # lane-dense output: pad E -> emb_p
    w2p = jnp.pad(w2, ((0, 0), (0, n_pad)))   # zero cols -> ReLU(0+0)=0, exact
    b2p = jnp.pad(b2, ((0, 0), (0, n_pad)))
    params = (
        w1.astype(jnp.bfloat16),
        b1.astype(jnp.float32).reshape(1, -1),
        w2p.astype(jnp.bfloat16),
        b2p.astype(jnp.float32).reshape(1, -1),
    )
    return params, emb_dim


# ----------------------------------------------------------------------------
# Wrappers
# ----------------------------------------------------------------------------
def user_tower_padded(x, params, *, tile_b=2048):
    """Fast path.

    x: (B, input_dim) f32.  Returns (Bp, emb_p) bf16 where emb_p is emb_dim
    padded to a multiple of 128 and Bp >= B is padded to the row tile.  Only
    rows [:B] and columns [:emb_dim] are meaningful; padded consumers (e.g. a
    zero-padded drink-embedding table) can use it directly without a slice.
    """
    w1b, b1f, w2b, b2f = params
    B, input_dim = x.shape
    hidden = w1b.shape[1]
    emb_p = w2b.shape[1]

    # Row tile: biggest that fits (default 2048), multiple of 16, and capped so
    # the 1-D grid has >=2 steps when the batch allows it (v7x: both TCs busy).
    tile_eff = min(tile_b, _round_up(B, SUBLANE_BF16))
    if B > SUBLANE_BF16:
        tile_eff = min(tile_eff, _round_up(pl.cdiv(B, 2), SUBLANE_BF16))
    Bp = _round_up(B, tile_eff)
    xp = jnp.pad(x, ((0, Bp - B), (0, 0))) if Bp != B else x
    # TODO(synk): for tile-unaligned B, the jnp.pad pass over x could be removed
    # by carrying B in SMEM and masking the tail rows before the store.

    grid = (Bp // tile_eff,)
    cost = pl.CostEstimate(
        flops=2 * Bp * (input_dim * hidden + hidden * emb_p),
        transcendentals=0,
        bytes_accessed=(Bp * input_dim * 4            # x read (f32)
                        + Bp * emb_p * 2              # out write (bf16)
                        + (input_dim * hidden + hidden * emb_p) * 2   # weights
                        + (hidden + emb_p) * 4),      # biases
    )

    out = pl.pallas_call(
        user_tower_kernel,
        out_shape=jax.ShapeDtypeStruct((Bp, emb_p), jnp.bfloat16),
        grid=grid,
        in_specs=[
            pl.BlockSpec((tile_eff, input_dim), lambda i: (i, 0)),   # x tile
            pl.BlockSpec((input_dim, hidden),   lambda i: (0, 0)),   # w1 resident
            pl.BlockSpec((1, hidden),           lambda i: (0, 0)),   # b1 resident
            pl.BlockSpec((hidden, emb_p),       lambda i: (0, 0)),   # w2 resident
            pl.BlockSpec((1, emb_p),            lambda i: (0, 0)),   # b2 resident
        ],
        out_specs=pl.BlockSpec((tile_eff, emb_p), lambda i: (i, 0)),
        compiler_params=pltpu.CompilerParams(
            dimension_semantics=("parallel",)),
        cost_estimate=cost,
    )(xp, w1b, b1f, w2b, b2f)
    return out


def user_tower(x, params, emb_dim, *, tile_b=2048):
    """Module-exact shape/dtype path: (B, emb_dim) f32 (bf16-quantized values)."""
    B = x.shape[0]
    out = user_tower_padded(x, params, tile_b=tile_b)
    return out[:B, :emb_dim].astype(jnp.float32)


# ----------------------------------------------------------------------------
# References & init
# ----------------------------------------------------------------------------
def init_linear_params(key, fan_in, fan_out):
    """Deterministic init matching nn.Linear's U(-1/sqrt(fan_in), 1/sqrt(fan_in))."""
    kw, kb = jax.random.split(key)
    bound = 1.0 / jnp.sqrt(jnp.float32(fan_in))
    w = jax.random.uniform(kw, (fan_in, fan_out), jnp.float32, -bound, bound)
    b = jax.random.uniform(kb, (1, fan_out), jnp.float32, -bound, bound)
    return w, b


def user_tower_ref(x, w1, b1, w2, b2):
    h = jnp.maximum(x @ w1 + b1, 0.0)
    return jnp.maximum(h @ w2 + b2, 0.0)


def user_tower_bf16_ref(x, w1, b1, w2, b2):
    """Reference with the same bf16 operand/output quantization as the kernel."""
    q = lambda a: a.astype(jnp.bfloat16).astype(jnp.float32)
    h = jnp.maximum(q(x) @ q(w1) + b1, 0.0)
    o = jnp.maximum(q(h) @ q(w2) + b2, 0.0)
    return o.astype(jnp.bfloat16).astype(jnp.float32)


# ----------------------------------------------------------------------------
# Demo / self-test
# ----------------------------------------------------------------------------
if __name__ == "__main__":
    key = jax.random.PRNGKey(0)
    k_x, k_l1, k_l2 = jax.random.split(key, 3)

    # Small shapes consistent with the module: user-feature vector -> drink-emb space.
    batch = 40       # not a tile multiple -> exercises batch padding
    input_dim = 32   # stand-in for user_preprocessor.transform(...).shape[1]
    hidden = 64      # fixed by the module
    emb_dim = 16     # stand-in for drink_embeddings.shape[1]
    # TODO(synk): CSV / joblib preprocessor loading from the original module is
    # host-side data plumbing with no Pallas equivalent; inputs are synthesized.

    x = jax.random.normal(k_x, (batch, input_dim), jnp.float32)
    w1, b1 = init_linear_params(k_l1, input_dim, hidden)
    w2, b2 = init_linear_params(k_l2, hidden, emb_dim)

    # One-time parameter prep (padding + bf16 casts hoisted out of per-call path).
    params, e_dim = prepare_user_tower_params(w1, b1, w2, b2)

    # Small tile -> multi-step grid (exercises pipelining + resident weights).
    out_small = jax.block_until_ready(user_tower(x, params, e_dim, tile_b=16))
    assert out_small.shape == (batch, emb_dim)

    # Default large-tile path (capped to >=2 grid steps for this batch).
    out_pad = jax.block_until_ready(user_tower_padded(x, params))
    assert out_pad.shape[1] % LANE == 0 and out_pad.dtype == jnp.bfloat16
    out_main = out_pad[:batch, :emb_dim].astype(jnp.float32)

    # Tight check vs a reference with identical bf16 quantization.
    ref_q = user_tower_bf16_ref(x, w1, b1, w2, b2)
    assert jnp.allclose(out_small, ref_q, atol=2e-2, rtol=2e-2)
    assert jnp.allclose(out_main, ref_q, atol=2e-2, rtol=2e-2)

    # Loose check vs pure-f32 module semantics (bf16 quantization error only).
    ref = user_tower_ref(x, w1, b1, w2, b2)
    assert jnp.allclose(out_main, ref, atol=5e-2, rtol=5e-2)

    # Padded columns must be exactly zero (zero-padded weights/bias + ReLU).
    assert jnp.all(out_pad[:batch, emb_dim:] == 0)

    print("KERNEL_OK")
</pallas_src>

<mosaic_0001>
module attributes {stable_mosaic.version = 11 : i64} {
  func.func @user_tower_kernel(%arg0: i32, %arg1: memref<16x32xf32, #tpu.memory_space<vmem>>, %arg2: memref<32x64xbf16, #tpu.memory_space<vmem>>, %arg3: memref<1x64xf32, #tpu.memory_space<vmem>>, %arg4: memref<64x128xbf16, #tpu.memory_space<vmem>>, %arg5: memref<1x128xf32, #tpu.memory_space<vmem>>, %arg6: memref<16x128xbf16, #tpu.memory_space<vmem>>) attributes {dimension_semantics = [#tpu.dimension_semantics<parallel>], iteration_bounds = array<i64: 3>, scalar_prefetch = 0 : i64, scratch_operands = 0 : i64, tpu.core_type = #tpu.core_type<tc>, window_params = [{transform_indices = @transform_0, window_bounds = array<i64: 16, 32>}, {pipeline_mode = #tpu.pipeline_mode<synchronous>, transform_indices = @transform_1, window_bounds = array<i64: 32, 64>}, {pipeline_mode = #tpu.pipeline_mode<synchronous>, transform_indices = @transform_2, window_bounds = array<i64: 1, 64>}, {pipeline_mode = #tpu.pipeline_mode<synchronous>, transform_indices = @transform_3, window_bounds = array<i64: 64, 128>}, {pipeline_mode = #tpu.pipeline_mode<synchronous>, transform_indices = @transform_4, window_bounds = array<i64: 1, 128>}, {transform_indices = @transform_5, window_bounds = array<i64: 16, 128>}]} {
    %c0 = arith.constant 0 : index
    %c0_0 = arith.constant 0 : index
    %0 = vector.load %arg1[%c0, %c0_0] : memref<16x32xf32, #tpu.memory_space<vmem>>, vector<16x32xf32>
    %1 = arith.truncf %0 : vector<16x32xf32> to vector<16x32xbf16>
    %c0_1 = arith.constant 0 : index
    %c0_2 = arith.constant 0 : index
    %2 = vector.load %arg2[%c0_1, %c0_2] : memref<32x64xbf16, #tpu.memory_space<vmem>>, vector<32x64xbf16>
    %cst = arith.constant dense<0.000000e+00> : vector<16x64xf32>
    %3 = tpu.matmul %1, %2, %cst {dimension_numbers = #tpu.dot_dimension_numbers<[1], [0], [0], [1], [0, 0, 1, 1], [], []>} : vector<16x32xbf16>, vector<32x64xbf16>, vector<16x64xf32> -> vector<16x64xf32>
    %c0_3 = arith.constant 0 : index
    %c0_4 = arith.constant 0 : index
    %4 = vector.load %arg3[%c0_3, %c0_4] : memref<1x64xf32, #tpu.memory_space<vmem>>, vector<1x64xf32>
    %5 = vector.broadcast %4 : vector<1x64xf32> to vector<16x64xf32>
    %6 = arith.addf %3, %5 : vector<16x64xf32>
    %cst_5 = arith.constant 0.000000e+00 : f32
    %7 = vector.broadcast %cst_5 : f32 to vector<16x64xf32>
    %8 = arith.maximumf %6, %7 : vector<16x64xf32>
    %9 = arith.truncf %8 : vector<16x64xf32> to vector<16x64xbf16>
    %c0_6 = arith.constant 0 : index
    %c0_7 = arith.constant 0 : index
    %10 = vector.load %arg4[%c0_6, %c0_7] : memref<64x128xbf16, #tpu.memory_space<vmem>>, vector<64x128xbf16>
    %cst_8 = arith.constant dense<0.000000e+00> : vector<16x128xf32>
    %11 = tpu.matmul %9, %10, %cst_8 {dimension_numbers = #tpu.dot_dimension_numbers<[1], [0], [0], [1], [0, 0, 1, 1], [], []>} : vector<16x64xbf16>, vector<64x128xbf16>, vector<16x128xf32> -> vector<16x128xf32>
    %c0_9 = arith.constant 0 : index
    %c0_10 = arith.constant 0 : index
    %12 = vector.load %arg5[%c0_9, %c0_10] : memref<1x128xf32, #tpu.memory_space<vmem>>, vector<1x128xf32>
    %13 = vector.broadcast %12 : vector<1x128xf32> to vector<16x128xf32>
    %14 = arith.addf %11, %13 : vector<16x128xf32>
    %cst_11 = arith.constant 0.000000e+00 : f32
    %15 = vector.broadcast %cst_11 : f32 to vector<16x128xf32>
    %16 = arith.maximumf %14, %15 : vector<16x128xf32>
    %17 = arith.truncf %16 : vector<16x128xf32> to vector<16x128xbf16>
    %c0_12 = arith.constant 0 : index
    %c0_13 = arith.constant 0 : index
    %18 = vector.load %arg6[%c0_12, %c0_13] : memref<16x128xbf16, #tpu.memory_space<vmem>>, vector<16x128xbf16>
    tpu.vector_store %arg6[%c0_12, %c0_13], %17 {strides = array<i32>} : memref<16x128xbf16, #tpu.memory_space<vmem>>, vector<16x128xbf16>,
    return
  }
  func.func @transform_0(%arg0: i32) -> (i32, i32) {
    %c0_i32 = arith.constant 0 : i32
    %c0_i32_0 = arith.constant 0 : i32
    return %arg0, %c0_i32 : i32, i32
  }
  func.func @transform_1(%arg0: i32) -> (i32, i32) {
    %c0_i32 = arith.constant 0 : i32
    %c0_i32_0 = arith.constant 0 : i32
    %c0_i32_1 = arith.constant 0 : i32
    return %c0_i32, %c0_i32_0 : i32, i32
  }
  func.func @transform_2(%arg0: i32) -> (i32, i32) {
    %c0_i32 = arith.constant 0 : i32
    %c0_i32_0 = arith.constant 0 : i32
    %c0_i32_1 = arith.constant 0 : i32
    return %c0_i32, %c0_i32_0 : i32, i32
  }
  func.func @transform_3(%arg0: i32) -> (i32, i32) {
    %c0_i32 = arith.constant 0 : i32
    %c0_i32_0 = arith.constant 0 : i32
    %c0_i32_1 = arith.constant 0 : i32
    return %c0_i32, %c0_i32_0 : i32, i32
  }
  func.func @transform_4(%arg0: i32) -> (i32, i32) {
    %c0_i32 = arith.constant 0 : i32
    %c0_i32_0 = arith.constant 0 : i32
    %c0_i32_1 = arith.constant 0 : i32
    return %c0_i32, %c0_i32_0 : i32, i32
  }
  func.func @transform_5(%arg0: i32) -> (i32, i32) {
    %c0_i32 = arith.constant 0 : i32
    %c0_i32_0 = arith.constant 0 : i32
    return %arg0, %c0_i32 : i32, i32
  }
}

</mosaic_0001>

<bundles_post_ra>
// kernel: tpu_custom_call.1
= control target key start
LH: loop header
LB: loop body
LE: loop exit
PB: predicated region body
PF: predicated region fallthrough
CT: control target
= control target key end

     0   :  { %10 = vsyncpa [#allocation3], 0  ;;  %s804_s0 = inlined_call_operand.vmem [shape: f32[48,32], index: 0, kind: input, shape index: {}]   ;;  %s805_s1 = inlined_call_operand.vmem [shape: bf16[32,64], index: 1, kind: input, shape index: {}]   ;;  %s806_s2 = inlined_call_operand.vmem [shape: f32[1,64], index: 2, kind: input, shape index: {}]   ;;  %s807_s3 = inlined_call_operand.vmem [shape: bf16[64,128], index: 3, kind: input, shape index: {}]   ;;  %s808_s4 = inlined_call_operand.vmem [shape: f32[1,128], index: 4, kind: input, shape index: {}]   ;;  %s809_s5 = inlined_call_operand.hbm [shape: bf16[48,128], index: 5, kind: output, shape index: {}]  }
   0x1   :  { %12 = vsyncpa [#allocation3 + $0x1], 0  ;;  %s679_s18 = smov 0   ;;  %s681_s19 = smov 0  }
   0x2   :  { %s683_s20 = smov 0   ;;  %s685_s21 = smov 0  }
   0x3 LB: > { %s700_s22 = sadd.s32 4294967295, %s642_s21   ;;  %s473_s23 = sadd.s32 4294967294, %s642_s21   ;;  %s642_s21 = sphi %s685_s21, %s815_s21   ;;  %s638_s20 = sphi %s683_s20, %s814_s20   ;;  %s634_s19 = sphi %s681_s19, %s813_s19   ;;  %s630_s18 = sphi %s679_s18, %s812_s18  }
   0x4   : > { %s704_s24 = sadd.s32 1, %s642_s21   ;;  %s135_s25 = sadd.s32 1, %s638_s20 }
   0x5   : > { %s132_s26 = ssub.s32 %s642_s21, %s704_s24  ;;  %p145_p0 = scmp.ne.s32.totalorder %s638_s20, %s634_s19 }
   0x6   : > { %p133_p1 = scmp.eq.s32.totalorder %s132_s26, 0  ;;  %p146_p2 = scmp.eq.s32.totalorder %s700_s22, 2 }
   0x7   : > { %p151_p3 = scmp.ne.s32.totalorder %s634_s19, %s630_s18  ;;  %p152_p4 = scmp.eq.s32.totalorder %s473_s23, 2 }
   0x8   : > { %s715_s27 = scalar_select %p133_p1, %s638_s20, %s135_s25  }
   0x9   : > { %p717_p5 = por %p146_p2, %p145_p0  ;;  %p721_p6 = por %p152_p4, %p151_p3 }
   0xa   : > { %p476_p7 = scmp.ge.s32.totalorder %s642_s21, 1  ;;  %p191_p8 = scmp.lt.s32.totalorder %s642_s21, 4 }
   0xc   : > { %p192_p9 = pnand %p476_p7, %p191_p8 }
   0xd   : > { %s478_s9 = sshll.u32 (!%p192_p9), %s700_s22, 1  ;;  %s216_s8 = sand.u32 (!%p192_p9), 1, %s634_s19  }
   0xe   : > { %195 = sbr.rel (%p192_p9) target bundleno = 448 (0x1c0), region = 40  ;;  %p220_p10 = scmp.lt.s32.totalorder (!%p192_p9), %s478_s9, 5 }
   0xf   : > { %s499_s14 = sshll.u32 (!%p192_p9), %s700_s22, 7  ;;  %s764_s23 = scalar_lea.sflag (!%p192_p9), [#allocation3], %s216_s8 }
  0x10   : > { %s762_s17 = scalar_lea.hbm (!%p192_p9), %s809_s5, %s499_s14  ;;  %s646_s22 = smov (!%p192_p9), [#allocation2]  }
  0x11   : > { %s586_s26 = sshll.u32 (!%p192_p9), %s646_s22, 4  ;;  %s587_s26 = int_to_ptr.vmem [resolvable:$false] %s586_s26 }
  0x12   : > { %s588_s30 = scalar_lea.vmem (!%p192_p9), %s587_s26, 256 }
  0x13   : > { %v576_v0 = vld [vmem:[%s805_s1 + $0x8] sm:$0xff]   ;;  %v644_v1 = vmov 0.0   ;;  %v577_v2 = vld [vmem:[%s805_s1] sm:$0xff]   ;;  %vm645_vm0 = vmmov 0   ;;  %v578_v3 = vld [vmem:[%s807_s3 + $0x18] sm:$0xff]   ;;  %s817_s9 = smov (!%p220_p10, %s478_s9), 5 }
  0x14   : > { %513 = vmatprep.subr.bf16.mxu0 %v644_v1  ;;  %521 = vmatprep.subr.bf16.mxu1 %v644_v1  ;;  %s479_s12 = sshll.u32 %s817_s9, 3  ;;  %vm253_vm1 = vcmask 261120   ;;  %v579_v7 = vld [vmem:[%s807_s3 + $0x10] sm:$0xff]   ;;  %v580_v8 = vld [vmem:[%s807_s3 + $0x8] sm:$0xff]   ;;  %v581_v9 = vld [vmem:[%s807_s3] sm:$0xff]   ;;  %vm340_vm2 = vcmask 523264  }
  0x15   : > { %514 = vmatpush3.bf16.msra.mxu0 %v576_v0  ;;  %517 = vmatprep.mubr.msk.bf16.mxu0 %vm645_vm0, %v644_v1  ;;  %s223_s15 = scalar_lea.vmem %s804_s0, %s479_s12  ;;  %v480_v10 = vld [vmem:[%s806_s2] ss:$0 sm:$0xff]  ;;  %s477_s9 = sshll.u32 %s216_s8, 3 }
  0x16   : > { %515 = vmatprep.subr.bf16.mxu0 %v644_v1  ;;  %529 = vmatprep.mubr.msk.bf16.mxu1 %vm645_vm0, %v644_v1  ;;  %v227_v4 = vld [vmem:[%s223_s15] sm:$0xff]  ;;  %v228_v5 = vld [vmem:[%s223_s15 + $0x8] sm:$0xff]  ;;  %s218_s12 = scalar_lea.vmem [#allocation2], %s477_s9 }
  0x17   : > { %522 = vmatpush3.bf16.msra.mxu1 %v578_v3  ;;  %v229_v6 = vpack.c.bf16 %v228_v5, %v227_v4  ;;  %v484_v20 = vld [vmem:[%s808_s4] ss:$0 sm:$0xff]  ;;  %s411_s13 = sshll.u32 %s218_s12, 4  ;;  %s757_s13 = int_to_ptr.vmem [resolvable:$true] %s411_s13 }
  0x18   : > { %523 = vmatprep.subr.bf16.mxu1 %v644_v1  ;;  %s582_s25 = scalar_lea.vmem %s757_s13, 128  ;;  %p589_p0 = scmp.lt.s32.totalorder %s757_s13, %s587_s26 }
  0x19   : > { %516 = vmatpush3.bf16.msra.mxu0 %v577_v2  ;;  %p583_p11 = scmp.ne.s32.totalorder %s757_s13, %s582_s25  ;;  %p590_p1 = scmp.lt.s32.totalorder %s588_s30, %s582_s25 }
  0x1b   : > { %524 = vmatpush3.bf16.msra.mxu1 %v579_v7  ;;  %p584_p12 = pnand %p583_p11, %p717_p5  ;;  %p591_p2 = por %p590_p1, %p589_p0 }
  0x1c   : > { %518 = vmatmul.mubr.msk.bf16.vlgmr.msra.gmra.mxu0 %vm253_vm1, %v229_v6  ;;  %525 = vmatprep.subr.bf16.mxu1 %v644_v1 }
  0x1d   : > { %p585_p13 = pneg %p584_p12 }
  0x1f   : > { %526 = vmatpush3.bf16.msra.mxu1 %v580_v8  ;;  %p592_p3 = pnand %p591_p2, %p585_p13 }
  0x20   : > { %527 = vmatprep.subr.bf16.mxu1 %v644_v1 }
  0x23   : > { %528 = vmatpush3.bf16.msra.mxu1 %v581_v9 }
  0xdc   : > { %v291_v11 = vpop.f32.mrf.mxu0 }
  0xdd   : > { %v292_v13 = vadd.f32 %v480_v10, %v291_v11 }
  0xde   : > { %v519_v12 = vpop.f32.mrf.mxu0 }
  0xdf   : > { %v298_v17 = vmax.f32 %v292_v13, 0.0 }
  0xe0   : > { %v294_v14 = vpop.f32.mrf.mxu0 }
  0xe1   : > { %v295_v15 = vadd.f32 %v480_v10, %v294_v14 }
  0xe2   : > { %v520_v16 = vpop.f32.mrf.mxu0 }
  0xe3   : > { %v299_v18 = vmax.f32 %v295_v15, 0.0 }
  0xe5   : > { %v300_v19 = vpack.c.bf16 %v299_v18, %v298_v17 }
  0xe7   : > { %530 = vmatmul.mubr.msk.bf16.vlgmr.msra.gmra.mxu1 %vm340_vm2, %v300_v19 }
 0x1a7   : > { %v378_v21 = vpop.f32.mrf.mxu1 }
 0x1a8   : > { %v379_v23 = vadd.f32 %v484_v20, %v378_v21 }
 0x1a9   : > { %v531_v22 = vpop.f32.mrf.mxu1 }
 0x1aa   : > { %v385_v27 = vmax.f32 %v379_v23, 0.0 }
 0x1ab   : > { %v381_v24 = vpop.f32.mrf.mxu1 }
 0x1ac   : > { %v382_v25 = vadd.f32 %v484_v20, %v381_v24 }
 0x1ad   : > { %v532_v26 = vpop.f32.mrf.mxu1 }
 0x1ae   : > { %v386_v28 = vmax.f32 %v382_v25, 0.0 }
 0x1b0   : > { %v503_v29 = vpack.c.bf16 %v386_v28, %v385_v27 }
 0x1b2   : > { %504 = vst [vmem:[%s218_s12] sm:$0xff] %v503_v29  }
 0x1b3   : > { %595 = shalt.err (!%p592_p3)
}
 0x1b4   : > { %s596_s6 = scalar_lea.hbm %s762_s17, 128  ;;  %s600_s9 = scalar_lea.hbm %s809_s5, 384 }
 0x1b5   : > { %p597_p4 = scmp.ne.s32.totalorder %s762_s17, %s596_s6  ;;  %p601_p9 = scmp.lt.s32.totalorder %s762_s17, %s809_s5 }
 0x1b6   : > { %p602_p10 = scmp.lt.s32.totalorder %s600_s9, %s596_s6 }
 0x1b7   : > { %p598_p7 = pnand %p597_p4, %p717_p5 }
 0x1b8   : > { %p603_p11 = por %p602_p10, %p601_p9 }
 0x1b9   : > { %p599_p8 = pneg %p598_p7 }
 0x1bb   : > { %p604_p12 = pnand %p603_p11, %p599_p8 }
 0x1bd   : > { %607 = shalt.err (!%p604_p12)
}
 0x1be   : > { %s647_s12 = smov 64   ;;  %s648_s14 = smov 4  }
 0x1bf   : > { %533 = dma.vmem_to_hbm [thread:$0]  (%p717_p5), %s757_s13, 128, %s762_s17, %s764_s23, %s647_s12, %s647_s12, %s648_s14  }
 0x1c0 PF: > { %p539_p13 = scmp.ge.s32.totalorder %s642_s21, 2  ;;  %s426_s15 = sand.u32 1, %s630_s18  }
 0x1c1   : > { %s427_s16 = scalar_lea.sflag [#allocation3], %s426_s15 }
 0x1c2   : > { %p536_p0 = pnand %p539_p13, %p721_p6 }
 0x1c4   : > { %p537_p1 = pneg %p536_p0 }
 0x1c6   : > { %625 = dma.done.wait (%p537_p1), %s427_s16, 128  }
 0x1c7   : > { %627 = vsyncadd (%p537_p1), %s427_s16, 4294967168  ;;  %p15_p2 = scmp.ge.s32.totalorder %s704_s24, 5   ;;  %s812_s18 = smov %s634_s19 }
 0x1c8   : > { %s813_s19 = smov %s638_s20  ;;  %s814_s20 = smov %s715_s27 }
 0x1c9   : > { %s815_s21 = smov %s704_s24  ;;  %17 = sbr.rel (!%p15_p2) target bundleno = 3 (0x3), region = 75 }
 0x1ce   :  { %432 = vsyncpa [#allocation3], 1 }
 0x1cf   :  { %434 = vsyncpa [#allocation3 + $0x1], 1 }

</bundles_post_ra>
